<compile_context>
chip_gen: v7x
topology: tpu7x:2x2x1
jax: 0.10.0
libtpu: 0.0.40
codegen_flags: <defaults>
</compile_context>

<pallas_src>
import math
from functools import partial

import jax
import jax.numpy as jnp
from jax import lax
from jax.experimental import pallas as pl
from jax.experimental.pallas import tpu as pltpu


# ---------------------------------------------------------------------------
# Hardware-aware helpers
# ---------------------------------------------------------------------------
def _tpu_vmem_capacity():
    """Physical VMEM per TensorCore, with a conservative fallback."""
    try:
        cap = int(pltpu.get_tpu_info().vmem_capacity_bytes)
        if cap > 0:
            return cap
    except Exception:
        pass
    return 64 << 20  # v7x per-core VMEM; v5e / v6e have 128 MiB.


def _attn_vmem_estimate(S, IC, tq):
    score_tmp = tq * S * (4 + 4 + 2)      # scores + exp (f32) + bf16 MXU copy
    residents = 2 * (2 * IC * S)          # phi (bf16), default double-buffered
    residents += 2 * (4 * IC * S)         # resident y output block (f32)
    tiles = 2 * 2 * (2 * IC * tq)         # theta + g query tiles (bf16)
    return int(1.4 * (score_tmp + residents + tiles))


def _pick_tq(S, IC, vmem_cap):
    """Query-tile size: as large as the chip's VMEM allows, preferring a
    divisor of S so the ragged-tile mask path is compiled out entirely."""
    if S <= 512:
        return S
    budget = max(vmem_cap - (16 << 20), 16 << 20)
    for cand in (512, 256, 128):
        if _attn_vmem_estimate(S, IC, cand) > budget:
            continue
        if S % cand == 0:
            return cand
        for d in range(cand, 127, -128):
            if S % d == 0:
                return d
        return cand
    return 128


def _pick_spatial_tile(HW, bytes_per_col):
    """1x1-conv kernels are HBM-bound: big lane-dense tiles amortize the
    ~0.35us per-grid-step overhead while double-buffered tiles stay small."""
    if HW <= 8192:
        return HW
    t = max(1024, min(8192, (6 << 20) // max(bytes_per_col, 1)))
    return max(128, (t // 128) * 128)


# ---------------------------------------------------------------------------
# Kernel 1: fused g/theta/phi 1x1 convs, channels-first layout.
#   x block: (1, C, T)   w: (3*IC, C)   b: (3*IC, 1)
#   outputs: three (1, IC, T) bf16 blocks (lane-dense along spatial axis).
# ---------------------------------------------------------------------------
def _proj_kernel(x_ref, w_ref, b_ref, g_ref, t_ref, p_ref, *, ic):
    out = (jnp.dot(w_ref[...], x_ref[0], preferred_element_type=jnp.float32)
           + b_ref[...]).astype(jnp.bfloat16)
    g_ref[0] = out[:ic]
    t_ref[0] = out[ic:2 * ic]
    p_ref[0] = out[2 * ic:]


def fused_projections(x_cfs, w_all, b_all, ic, tile_hw=None):
    """x_cfs: (n, C, HW), w_all: (3*IC, C), b_all: (3*IC, 1) -> 3x (n, IC, HW) bf16."""
    n, C, HW = x_cfs.shape
    if tile_hw is None:
        tile_hw = _pick_spatial_tile(HW, bytes_per_col=2 * (4 * C + 2 * 3 * ic))
    grid = (n, pl.cdiv(HW, tile_hw))
    out_sds = jax.ShapeDtypeStruct((n, ic, HW), jnp.bfloat16)
    return pl.pallas_call(
        partial(_proj_kernel, ic=ic),
        out_shape=(out_sds, out_sds, out_sds),
        grid=grid,
        in_specs=[
            pl.BlockSpec((1, C, tile_hw), lambda i, t: (i, 0, t)),
            pl.BlockSpec((3 * ic, C), lambda i, t: (0, 0)),
            pl.BlockSpec((3 * ic, 1), lambda i, t: (0, 0)),
        ],
        out_specs=(
            pl.BlockSpec((1, ic, tile_hw), lambda i, t: (i, 0, t)),
            pl.BlockSpec((1, ic, tile_hw), lambda i, t: (i, 0, t)),
            pl.BlockSpec((1, ic, tile_hw), lambda i, t: (i, 0, t)),
        ),
        compiler_params=pltpu.CompilerParams(
            dimension_semantics=("parallel", "parallel")),
    )(x_cfs, w_all, b_all)


# ---------------------------------------------------------------------------
# Kernel 2: non-local attention hot path (tiled over query columns).
#   theta/phi/g arrive in (IC, S) bf16 layout, scale pre-folded into theta.
#   scores (S, tq) = phi^T-contraction with the theta tile (keys on sublanes,
#   queries on lanes) so the softmax statistics are lane-oriented and the
#   1/denominator folds into the small (IC, tq) g operand.
#   y (IC, S) is a resident f32 accumulator (one partial per core split).
# ---------------------------------------------------------------------------
_TN_DIMS = (((0,), (0,)), ((), ()))   # contract dim 0 of both operands
_NT_DIMS = (((1,), (1,)), ((), ()))   # contract dim 1 of both (A @ B^T)


def _attention_kernel(theta_ref, phi_ref, g_ref, y_ref, *,
                      mode, s_total, tq, tiles_per_core, needs_mask):
    c = pl.program_id(0)
    qi = pl.program_id(1)

    @pl.when(qi == 0)
    def _():
        y_ref[...] = jnp.zeros_like(y_ref)

    th = theta_ref[...]            # (IC, tq) bf16, scale already folded in
    g_blk = g_ref[...]             # (IC, tq) bf16

    if needs_mask:
        # Ragged last tile (only compiled when tq does not divide S): zero the
        # padded query columns of the *small* operands so the scores stay
        # finite and their contribution to the resident y is exactly 0.
        q0 = (c * tiles_per_core + qi) * tq
        col = lax.broadcasted_iota(jnp.int32, (1, tq), 1) + q0
        keep = col < s_total
        th = jnp.where(keep, th, 0.0)
        g_blk = jnp.where(keep, g_blk, 0.0)

    # (S, tq) scores: contraction over IC, native bf16 MXU with f32 accum.
    s = lax.dot_general(phi_ref[...], th, dimension_numbers=_TN_DIMS,
                        preferred_element_type=jnp.float32)

    if mode == "embedded_gaussian":
        m = jnp.max(s, axis=0, keepdims=True)                  # (1, tq)
        e = jnp.exp(s - m)                                     # (S, tq)  EUP
        denom = jnp.sum(e, axis=0, keepdims=True)              # (1, tq)
        inv = pl.reciprocal(denom, approx=True)                # (1, tq)  EUP
        # Fold 1/denom into the tiny (IC, tq) operand (no O(tq*S) multiply).
        g_blk = (g_blk * inv).astype(jnp.bfloat16)
        p = e.astype(jnp.bfloat16)
    else:  # dot_product: the 1/S scale is folded into the theta projection.
        p = s.astype(jnp.bfloat16)

    # y[:, key] += sum_q g[:, q] * p[key, q]  (NT matmul, f32 accumulation).
    y_ref[0] += lax.dot_general(g_blk, p, dimension_numbers=_NT_DIMS,
                                preferred_element_type=jnp.float32)


def attention(theta, phi, g, *, mode, tq=None, core_split=1):
    """theta/phi/g: (IC, S) bf16 -> y: (IC, S) f32."""
    IC, S = theta.shape
    cap = _tpu_vmem_capacity()
    if tq is None:
        tq = _pick_tq(S, IC, cap)
    tq = min(tq, S)

    n_tiles = pl.cdiv(S, tq)
    core_split = max(1, min(int(core_split), n_tiles))
    tiles_per_core = pl.cdiv(n_tiles, core_split)
    needs_mask = (core_split * tiles_per_core * tq) > S

    est = _attn_vmem_estimate(S, IC, tq)
    # Never request more VMEM than the chip has (v7x: 64 MiB per TensorCore).
    vmem_limit = None if est <= (16 << 20) else min(
        est, max(cap - (8 << 20), 32 << 20))

    if core_split == 1 and not needs_mask:
        q_map = lambda c, i: (0, i)
    else:
        def q_map(c, i):
            return (0, jnp.minimum(c * tiles_per_core + i, n_tiles - 1))

    kernel = partial(_attention_kernel, mode=mode, s_total=S, tq=tq,
                     tiles_per_core=tiles_per_core, needs_mask=needs_mask)

    y_parts = pl.pallas_call(
        kernel,
        out_shape=jax.ShapeDtypeStruct((core_split, IC, S), jnp.float32),
        grid=(core_split, tiles_per_core),
        in_specs=[
            pl.BlockSpec((IC, tq), q_map),                # theta query tile
            # TODO(synk): pipeline_mode=pl.Buffered(1) on phi would drop its
            # second buffer (~2*IC*S bytes, helps on v7x); left at the default.
            pl.BlockSpec((IC, S), lambda c, i: (0, 0)),   # phi (resident)
            pl.BlockSpec((IC, tq), q_map),                # g columns for tile
        ],
        out_specs=pl.BlockSpec((1, IC, S), lambda c, i: (c, 0, 0)),
        compiler_params=pltpu.CompilerParams(
            dimension_semantics=("parallel", "arbitrary"),
            vmem_limit_bytes=vmem_limit),
        cost_estimate=pl.CostEstimate(
            flops=4 * S * S * IC,
            transcendentals=(S * S) if mode == "embedded_gaussian" else 0,
            bytes_accessed=3 * 2 * IC * S + 4 * IC * S * (core_split + 1)),
    )(theta, phi, g)

    if core_split == 1:
        return y_parts.reshape(IC, S)
    return jnp.sum(y_parts, axis=0)


# ---------------------------------------------------------------------------
# Kernel 3: conv_out 1x1 + residual, channels-first layout.
#   y block: (1, IC, T)   x block: (1, C, T)   w: (C, IC)   b: (C, 1)
# ---------------------------------------------------------------------------
def _residual_conv_kernel(y_ref, x_ref, w_ref, b_ref, o_ref):
    o_ref[0] = x_ref[0] + (
        jnp.dot(w_ref[...], y_ref[0], preferred_element_type=jnp.float32)
        + b_ref[...])


def residual_out_conv(y_cfs, x_cfs, w_out, b_out, tile_hw=None):
    """y_cfs: (n, IC, HW), x_cfs: (n, C, HW), w_out: (C, IC), b_out: (C, 1)."""
    n, C, HW = x_cfs.shape
    ic = y_cfs.shape[1]
    if tile_hw is None:
        tile_hw = _pick_spatial_tile(HW, bytes_per_col=2 * 4 * (ic + 2 * C))
    grid = (n, pl.cdiv(HW, tile_hw))
    return pl.pallas_call(
        _residual_conv_kernel,
        out_shape=jax.ShapeDtypeStruct((n, C, HW), jnp.float32),
        grid=grid,
        in_specs=[
            pl.BlockSpec((1, ic, tile_hw), lambda i, t: (i, 0, t)),
            pl.BlockSpec((1, C, tile_hw), lambda i, t: (i, 0, t)),
            pl.BlockSpec((C, ic), lambda i, t: (0, 0)),
            pl.BlockSpec((C, 1), lambda i, t: (0, 0)),
        ],
        out_specs=pl.BlockSpec((1, C, tile_hw), lambda i, t: (i, 0, t)),
        compiler_params=pltpu.CompilerParams(
            dimension_semantics=("parallel", "parallel")),
    )(y_cfs, x_cfs, w_out, b_out)


# ---------------------------------------------------------------------------
# Full forward (only free row-major reshapes outside the kernels).
# ---------------------------------------------------------------------------
def pixel_agg_n_forward(x, params, *, mode="embedded_gaussian", use_scale=True,
                        core_split=1):
    """core_split=2 splits the attention query tiles across both TensorCores
    on v7x (per-core partial y's are summed); keep 1 on single-TC v5e/v6e."""
    n, C, h, w = x.shape
    IC = params["w_g"].shape[0]
    HW = h * w
    S = n * HW

    x_cfs = x.reshape(n, C, HW)                                     # free

    # Fold the pairwise-weight scale into the theta projection (exact f32 math
    # on the host, zero cost inside any kernel).
    if mode == "embedded_gaussian":
        scale = (1.0 / math.sqrt(float(IC))) if use_scale else 1.0
    else:  # dot_product
        scale = 1.0 / float(S)

    w_all = jnp.concatenate(
        [params["w_g"], scale * params["w_theta"], params["w_phi"]], axis=0)
    b_all = jnp.concatenate(
        [params["b_g"], scale * params["b_theta"], params["b_phi"]], axis=0
    ).reshape(3 * IC, 1)

    g_cfs, t_cfs, p_cfs = fused_projections(x_cfs, w_all, b_all, IC)  # bf16

    # torch's .view(1, IC, -1) is a row-major reinterpretation of the NCHW
    # buffer -> identical to reshaping the (n, IC, HW) outputs to (IC, S).
    g_x = g_cfs.reshape(IC, S)
    theta_x = t_cfs.reshape(IC, S)
    phi_x = p_cfs.reshape(IC, S)

    y = attention(theta_x, phi_x, g_x, mode=mode, core_split=core_split)

    y_cfs = y.reshape(n, IC, HW)                                    # free
    out_cfs = residual_out_conv(
        y_cfs, x_cfs, params["w_out"], params["b_out"].reshape(C, 1))
    return out_cfs.reshape(n, C, h, w)
    # TODO(synk): the PyTorch n > 1000 chunked branch is not implemented.
    # TODO(synk): conv_out + residual could be fused into the attention
    # epilogue to skip the y HBM round trip, but the .view(1, IC, -1)
    # batch/channel remix makes that layout-awkward; kept as a separate
    # lane-dense kernel.


# ---------------------------------------------------------------------------
# Pure-JAX reference (direct transcription of the PyTorch forward, n <= 1000)
# ---------------------------------------------------------------------------
def reference_forward(x, params, *, mode="embedded_gaussian", use_scale=True):
    n, C, h, w = x.shape
    IC = params["w_g"].shape[0]

    def conv(xx, wt, b):
        return jnp.einsum("nchw,oc->nohw", xx, wt) + b[None, :, None, None]

    g_x = conv(x, params["w_g"], params["b_g"]).reshape(1, IC, -1)
    theta_x = conv(x, params["w_theta"], params["b_theta"]).reshape(1, IC, -1)
    theta_x = jnp.transpose(theta_x, (0, 2, 1))
    phi_x = conv(x, params["w_phi"], params["b_phi"]).reshape(1, IC, -1)

    pw = jnp.matmul(theta_x, phi_x)
    if mode == "embedded_gaussian":
        if use_scale:
            pw = pw / (theta_x.shape[-1] ** 0.5)
        pw = jax.nn.softmax(pw, axis=-1)
    else:
        pw = pw / pw.shape[-1]

    y = jnp.matmul(g_x, pw).reshape(n, IC, h, w)
    return x + conv(y, params["w_out"], params["b_out"])


if __name__ == "__main__":
    # module config: in_channels=4, reduction=2 -> inter_channels=2
    # zeros_init=False so conv_out is non-trivial (normal std=0.01), biases 0.
    n, C, h, w = 2, 4, 16, 16
    IC = C // 2
    std = 0.01

    key = jax.random.PRNGKey(0)
    k_x, k_g, k_t, k_p, k_o = jax.random.split(key, 5)

    x = jax.random.normal(k_x, (n, C, h, w), dtype=jnp.float32)
    params = {
        "w_g": std * jax.random.normal(k_g, (IC, C), dtype=jnp.float32),
        "b_g": jnp.zeros((IC,), jnp.float32),
        "w_theta": std * jax.random.normal(k_t, (IC, C), dtype=jnp.float32),
        "b_theta": jnp.zeros((IC,), jnp.float32),
        "w_phi": std * jax.random.normal(k_p, (IC, C), dtype=jnp.float32),
        "b_phi": jnp.zeros((IC,), jnp.float32),
        "w_out": std * jax.random.normal(k_o, (C, IC), dtype=jnp.float32),
        "b_out": jnp.zeros((C,), jnp.float32),
    }

    for mode in ("embedded_gaussian", "dot_product"):
        out = pixel_agg_n_forward(x, params, mode=mode, use_scale=True)
        out = jax.block_until_ready(out)
        ref = jax.block_until_ready(
            reference_forward(x, params, mode=mode, use_scale=True))
        assert out.shape == (n, C, h, w)
        err = float(jnp.max(jnp.abs(out - ref)))
        # bf16 projections + bf16 MXU matmuls + approx reciprocal; still >10x
        # margin over the observed error at these magnitudes.
        assert jnp.allclose(out, ref, atol=5e-5, rtol=5e-5), (
            f"{mode}: max abs err = {err}")

    print("KERNEL_OK")
</pallas_src>

<mosaic_0001>
module attributes {stable_mosaic.version = 11 : i64} {
  func.func @_proj_kernel(%arg0: i32, %arg1: i32, %arg2: memref<1x4x256xf32, #tpu.memory_space<vmem>>, %arg3: memref<6x4xf32, #tpu.memory_space<vmem>>, %arg4: memref<6x1xf32, #tpu.memory_space<vmem>>, %arg5: memref<1x2x256xbf16, #tpu.memory_space<vmem>>, %arg6: memref<1x2x256xbf16, #tpu.memory_space<vmem>>, %arg7: memref<1x2x256xbf16, #tpu.memory_space<vmem>>) attributes {dimension_semantics = [#tpu.dimension_semantics<parallel>, #tpu.dimension_semantics<parallel>], iteration_bounds = array<i64: 2, 1>, scalar_prefetch = 0 : i64, scratch_operands = 0 : i64, tpu.core_type = #tpu.core_type<tc>, window_params = [{transform_indices = @transform_0, window_bounds = array<i64: 1, 4, 256>}, {pipeline_mode = #tpu.pipeline_mode<synchronous>, transform_indices = @transform_1, window_bounds = array<i64: 6, 4>}, {pipeline_mode = #tpu.pipeline_mode<synchronous>, transform_indices = @transform_2, window_bounds = array<i64: 6, 1>}, {transform_indices = @transform_3, window_bounds = array<i64: 1, 2, 256>}, {transform_indices = @transform_4, window_bounds = array<i64: 1, 2, 256>}, {transform_indices = @transform_5, window_bounds = array<i64: 1, 2, 256>}]} {
    %c0 = arith.constant 0 : index
    %c0_0 = arith.constant 0 : index
    %0 = vector.load %arg3[%c0, %c0_0] : memref<6x4xf32, #tpu.memory_space<vmem>>, vector<6x4xf32>
    %c0_1 = arith.constant 0 : index
    %c0_2 = arith.constant 0 : index
    %c0_3 = arith.constant 0 : index
    %1 = vector.load %arg2[%c0_1, %c0_2, %c0_3] : memref<1x4x256xf32, #tpu.memory_space<vmem>>, vector<1x4x256xf32>
    %2 = vector.shape_cast %1 : vector<1x4x256xf32> to vector<4x256xf32>
    %cst = arith.constant dense<0.000000e+00> : vector<6x256xf32>
    %3 = tpu.matmul %0, %2, %cst {dimension_numbers = #tpu.dot_dimension_numbers<[1], [0], [0], [1], [0, 0, 1, 1], [], []>} : vector<6x4xf32>, vector<4x256xf32>, vector<6x256xf32> -> vector<6x256xf32>
    %c0_4 = arith.constant 0 : index
    %c0_5 = arith.constant 0 : index
    %4 = vector.load %arg4[%c0_4, %c0_5] : memref<6x1xf32, #tpu.memory_space<vmem>>, vector<6x1xf32>
    %5 = vector.broadcast %4 : vector<6x1xf32> to vector<6x256xf32>
    %6 = arith.addf %3, %5 : vector<6x256xf32>
    %7 = arith.truncf %6 : vector<6x256xf32> to vector<6x256xbf16>
    %8 = vector.extract_strided_slice %7 {offsets = [0, 0], sizes = [2, 256], strides = [1, 1]} : vector<6x256xbf16> to vector<2x256xbf16>
    %c0_6 = arith.constant 0 : index
    %c0_7 = arith.constant 0 : index
    %c0_8 = arith.constant 0 : index
    %9 = vector.load %arg5[%c0_6, %c0_7, %c0_8] : memref<1x2x256xbf16, #tpu.memory_space<vmem>>, vector<1x2x256xbf16>
    %10 = vector.shape_cast %9 : vector<1x2x256xbf16> to vector<2x256xbf16>
    %11 = vector.shape_cast %8 : vector<2x256xbf16> to vector<1x2x256xbf16>
    tpu.vector_store %arg5[%c0_6, %c0_7, %c0_8], %11 {strides = array<i32>} : memref<1x2x256xbf16, #tpu.memory_space<vmem>>, vector<1x2x256xbf16>,
    %12 = vector.extract_strided_slice %7 {offsets = [2, 0], sizes = [2, 256], strides = [1, 1]} : vector<6x256xbf16> to vector<2x256xbf16>
    %c0_9 = arith.constant 0 : index
    %c0_10 = arith.constant 0 : index
    %c0_11 = arith.constant 0 : index
    %13 = vector.load %arg6[%c0_9, %c0_10, %c0_11] : memref<1x2x256xbf16, #tpu.memory_space<vmem>>, vector<1x2x256xbf16>
    %14 = vector.shape_cast %13 : vector<1x2x256xbf16> to vector<2x256xbf16>
    %15 = vector.shape_cast %12 : vector<2x256xbf16> to vector<1x2x256xbf16>
    tpu.vector_store %arg6[%c0_9, %c0_10, %c0_11], %15 {strides = array<i32>} : memref<1x2x256xbf16, #tpu.memory_space<vmem>>, vector<1x2x256xbf16>,
    %16 = vector.extract_strided_slice %7 {offsets = [4, 0], sizes = [2, 256], strides = [1, 1]} : vector<6x256xbf16> to vector<2x256xbf16>
    %c0_12 = arith.constant 0 : index
    %c0_13 = arith.constant 0 : index
    %c0_14 = arith.constant 0 : index
    %17 = vector.load %arg7[%c0_12, %c0_13, %c0_14] : memref<1x2x256xbf16, #tpu.memory_space<vmem>>, vector<1x2x256xbf16>
    %18 = vector.shape_cast %17 : vector<1x2x256xbf16> to vector<2x256xbf16>
    %19 = vector.shape_cast %16 : vector<2x256xbf16> to vector<1x2x256xbf16>
    tpu.vector_store %arg7[%c0_12, %c0_13, %c0_14], %19 {strides = array<i32>} : memref<1x2x256xbf16, #tpu.memory_space<vmem>>, vector<1x2x256xbf16>,
    return
  }
  func.func @transform_0(%arg0: i32, %arg1: i32) -> (i32, i32, i32) {
    %c0_i32 = arith.constant 0 : i32
    %c0_i32_0 = arith.constant 0 : i32
    return %arg0, %c0_i32, %arg1 : i32, i32, i32
  }
  func.func @transform_1(%arg0: i32, %arg1: i32) -> (i32, i32) {
    %c0_i32 = arith.constant 0 : i32
    %c0_i32_0 = arith.constant 0 : i32
    %c0_i32_1 = arith.constant 0 : i32
    return %c0_i32, %c0_i32_0 : i32, i32
  }
  func.func @transform_2(%arg0: i32, %arg1: i32) -> (i32, i32) {
    %c0_i32 = arith.constant 0 : i32
    %c0_i32_0 = arith.constant 0 : i32
    %c0_i32_1 = arith.constant 0 : i32
    return %c0_i32, %c0_i32_0 : i32, i32
  }
  func.func @transform_3(%arg0: i32, %arg1: i32) -> (i32, i32, i32) {
    %c0_i32 = arith.constant 0 : i32
    %c0_i32_0 = arith.constant 0 : i32
    return %arg0, %c0_i32, %arg1 : i32, i32, i32
  }
  func.func @transform_4(%arg0: i32, %arg1: i32) -> (i32, i32, i32) {
    %c0_i32 = arith.constant 0 : i32
    %c0_i32_0 = arith.constant 0 : i32
    return %arg0, %c0_i32, %arg1 : i32, i32, i32
  }
  func.func @transform_5(%arg0: i32, %arg1: i32) -> (i32, i32, i32) {
    %c0_i32 = arith.constant 0 : i32
    %c0_i32_0 = arith.constant 0 : i32
    return %arg0, %c0_i32, %arg1 : i32, i32, i32
  }
}

</mosaic_0001>

<bundles_post_ra>
// kernel: tpu_custom_call.1
= control target key start
LH: loop header
LB: loop body
LE: loop exit
PB: predicated region body
PF: predicated region fallthrough
CT: control target
= control target key end

     0   :  { %s1091_s0 = inlined_call_operand.vmem [shape: f32[2,4,256], index: 0, kind: input, shape index: {}]   ;;  %s1092_s1 = inlined_call_operand.vmem [shape: f32[6,4], index: 1, kind: input, shape index: {}]   ;;  %s1093_s2 = inlined_call_operand.vmem [shape: f32[6,1], index: 2, kind: input, shape index: {}]   ;;  %s1094_s3 = inlined_call_operand.hbm [shape: bf16[2,2,256], index: 3, kind: output, shape index: {0}]   ;;  %s1095_s4 = inlined_call_operand.hbm [shape: bf16[2,2,256], index: 4, kind: output, shape index: {1}]   ;;  %s1096_s5 = inlined_call_operand.hbm [shape: bf16[2,2,256], index: 5, kind: output, shape index: {2}]  }
   0x1   :  { %1100 = sst [smem:[#allocation9_spill]] %s1091_s0 }
   0x2   :  { %11 = vsyncpa [#allocation3], 0 }
   0x3   :  { %13 = vsyncpa [#allocation3 + $0x1], 0 }
   0x4   :  { %14 = vsyncpa [#allocation5], 0 }
   0x5   :  { %16 = vsyncpa [#allocation5 + $0x1], 0  ;;  %s881_s18 = smov 0   ;;  %s883_s19 = smov 0  }
   0x6   :  { %s885_s20 = smov 0   ;;  %s887_s21 = smov 0  }
   0x7   :  { %s889_s22 = smov 0   ;;  %s891_s23 = smov 0  }
   0x8 LB: > { %s604_s24 = sadd.s32 4294967295, %s843_s23   ;;  %s1097_s25 = sadd.s32 4294967294, %s843_s23   ;;  %s843_s23 = sphi %s891_s23, %s22_s23   ;;  %s839_s22 = sphi %s889_s22, %s1111_s22   ;;  %s835_s21 = sphi %s887_s21, %s1110_s21   ;;  %s831_s20 = sphi %s885_s20, %s1109_s20   ;;  %s827_s19 = sphi %s883_s19, %s1108_s19   ;;  %s823_s18 = sphi %s881_s18, %s1107_s18  }
   0x9   : > { %s34_s26 = sadd.s32 1, %s839_s22  ;;  %s113_s27 = sadd.s32 1, %s831_s20 }
   0xa   : > { %p36_p0 = scmp.ge.s32.totalorder %s34_s26, 2  ;;  %p123_p1 = scmp.ne.s32.totalorder %s831_s20, %s827_s19 }
   0xb   : > { %p124_p2 = scmp.eq.s32.totalorder %s604_s24, 1  ;;  %p129_p3 = scmp.ne.s32.totalorder %s827_s19, %s823_s18 }
   0xc   : > { %s1113_s26 = smov (%p36_p0, %s34_s26), 0  ;;  %p130_p5 = scmp.eq.s32.totalorder %s1097_s25, 1 }
   0xd   : > { %p923_p4 = por %p124_p2, %p123_p1  ;;  %s108_s29 = ssub.s32 %s839_s22, %s1113_s26 }
   0xe   : > { %p608_p6 = scmp.ge.s32.totalorder %s843_s23, 1  ;;  %p111_p7 = scmp.eq.s32.totalorder %s108_s29, 0 }
   0xf   : > { %p932_p8 = por %p130_p5, %p129_p3  ;;  %p223_p9 = scmp.lt.s32.totalorder %s843_s23, 3 }
  0x10   : > { %s938_s6 = scalar_select %p111_p7, %s831_s20, %s113_s27  }
  0x11   : > { %p224_p10 = pnand %p608_p6, %p223_p9 }
  0x12   : > { %p266_p11 = scmp.lt.s32.totalorder (!%p224_p10), %s835_s21, 1  ;;  %v845_v0 = vmov (!%p224_p10), 0.0   ;;  %v280_v1 = vld [vmem:[%s1093_s2] sm:$0x3f] (!%p224_p10)  ;;  %v846_v2 = vmov (!%p224_p10), 0   ;;  %s1103_s0 = sld [smem:[#allocation9_spill]] (!%p224_p10)  ;;  %v376_v8 = vlaneseq (!%p224_p10) }
  0x13   : > { %227 = sbr.rel (%p224_p10) target bundleno = 315 (0x13b), region = 32  ;;  %361 = vmatprep.mubr.f32.mxu0 (!%p224_p10), %v845_v0  ;;  %703 = vset.pattern.permute.xlu0 (!%p224_p10), %v846_v2  ;;  %vm292_vm0 = vcmask (!%p224_p10), 1043456   ;;  %v278_v5 = vld [vmem:[%s1092_s1] sm:$0x3f] (!%p224_p10)  ;;  %vm288_vm1 = vcmask (!%p224_p10), 31744   ;;  %s248_s16 = sand.u32 (!%p224_p10), 1, %s827_s19  }
  0x14   : > { %283 = vperm.xlu0 (!%p224_p10), %703, %v280_v1   ;;  %v847_v6 = vmov (!%p224_p10), 1966171168   ;;  %v377_v11 = vshrl.u32 (!%p224_p10), %v376_v8, 7  ;;  %s952_s17 = sshll.u32 (!%p224_p10), %s248_s16, 1  ;;  %s955_s27 = sshll.u32 (!%p224_p10), %s835_s21, 5 }
  0x15   : > { %v374_v7 = vunpack.c.l.s4 (!%p224_p10), %v847_v6  ;;  %s250_s29 = scalar_lea.vmem (!%p224_p10), [#allocation2], %s952_s17  ;;  %s960_s8 = sand.u32 (!%p224_p10), 1, %s604_s24  }
  0x16   : > { %s429_s7 = sshll.u32 (!%p224_p10), %s250_s29, 4  ;;  %s982_s25 = scalar_lea.hbm (!%p224_p10), %s1095_s4, %s955_s27  ;;  %s971_s7 = int_to_ptr.vmem [resolvable:$true] %s429_s7 }
  0x17   : > { %v375_v10 = vunpack.c.0.s8 (!%p224_p10), %v374_v7  ;;  %s403_s11 = scalar_lea.sflag (!%p224_p10), [#allocation3], %s248_s16  ;;  %s705_s12 = scalar_lea.vmem (!%p224_p10), %s971_s7, 32 }
  0x18   : > { %p706_p12 = scmp.ne.s32.totalorder (!%p224_p10), %s971_s7, %s705_s12 }
  0x19   : > { %v378_v16 = vsub.s32 (!%p224_p10), %v375_v10, %v377_v11 }
  0x1a   : > { %s267_s9 = scalar_select %p266_p11, %s835_s21, 1 }
  0x1b   : > { %s1099_s21 = scalar_lea.vmem [#allocation6], %s952_s17  ;;  %p707_p13 = pnand %p706_p12, %p923_p4 }
  0x1c   : > { %s631_s10 = sshll.u32 %s267_s9, 3  ;;  %s1098_s9 = scalar_lea.vmem [#allocation4], %s952_s17 }
  0x1d   : > { %s273_s13 = scalar_lea.vmem %s1103_s0, %s631_s10  ;;  %s445_s10 = sshll.u32 %s1098_s9, 4  ;;  %s984_s10 = int_to_ptr.vmem [resolvable:$true] %s445_s10 }
  0x1e   : > { %v279_v3 = vld [vmem:[%s273_s13] sm:$0xff]  ;;  %s969_s13 = scalar_lea.hbm %s1094_s3, %s955_s27  ;;  %s976_s14 = sshll.u32 %s1099_s21, 4  ;;  %s1016_s14 = int_to_ptr.vmem [resolvable:$true] %s976_s14 }
  0x1f   : > { %v287_v4 = vcombine.high %v279_v3, %v279_v3  ;;  %p708_p0 = pneg %p707_p13  ;;  %s848_s9 = smov [#allocation2]  }
  0x20   : > { %s709_s0 = sshll.u32 %s848_s9, 4  ;;  %s710_s0 = int_to_ptr.vmem [resolvable:$false] %s709_s0 }
  0x21   : > { %614 = vmatprep.subr.msk.mxu0 %vm292_vm0, %v287_v4  ;;  %s711_s21 = scalar_lea.vmem %s710_s0, 64  ;;  %p712_p1 = scmp.lt.s32.totalorder %s971_s7, %s710_s0 }
  0x22   : > { %615 = vmatpush1.msk.msra.mxu0 %vm292_vm0, %v279_v3  ;;  %p713_p2 = scmp.lt.s32.totalorder %s711_s21, %s705_s12 }
  0x23   : > { %616 = vmatmul.mubr.msk.f32.vlgmr.msra.gmra.mrb[0].mxu0 %vm288_vm1, %v278_v5 }
  0x24   : > { %p714_p3 = por %p713_p2, %p712_p1 }
  0x26   : > { %p715_p5 = pnand %p714_p3, %p708_p0 }
  0x93   : > { %v284_v9 = vpop.permute.xlu0 %283 }
  0xf6   : > { %v363_v12 = vpop.f32.mrb[0].mxu0 }
  0xf7   : > { %v364_v13 = vadd.f32 %v363_v12, %v284_v9  ;;  %v365_v14 = vpop.f32.mrb[1].mxu0 }
  0xf8   : > { %v366_v15 = vadd.f32 %v365_v14, %v284_v9 }
  0xfa   : > { %v617_v17 = vpack.c.bf16 %v366_v15, %v364_v13 }
  0xfc   : > { %v379_v18 = vrot.slane %v617_v17, %v378_v16 }
  0xfe   : > { %v389_v19 = vcombine.high %v379_v18, %v379_v18  ;;  %618 = vst.sshfl [vmem:[%s250_s29] sm:$0x5 pattern:$0x73625140] %v379_v18  ;;  %v386_v20 = vrot.slane %v379_v18, %v378_v16 }
  0xff   : > { %718 = shalt.err (!%p715_p5)
}
 0x100   : > { %s719_s16 = scalar_lea.hbm %s969_s13, 32  ;;  %s723_s9 = scalar_lea.hbm %s1094_s3, 64 }
 0x101   : > { %p720_p6 = scmp.ne.s32.totalorder %s969_s13, %s719_s16  ;;  %p724_p10 = scmp.lt.u32.totalorder %s969_s13, %s1094_s3 }
 0x102   : > { %p725_p11 = scmp.lt.u32.totalorder %s723_s9, %s719_s16  ;;  %p727_p13 = scmp.lt.u32.totalorder %s719_s16, %s969_s13 }
 0x103   : > { %p721_p7 = pnand %p720_p6, %p923_p4 }
 0x104   : > { %p726_p12 = por %p725_p11, %p724_p10 }
 0x105   : > { %p722_p9 = pneg %p721_p7 }
 0x106   : > { %p728_p0 = por %p727_p13, %p726_p12 }
 0x108   : > { %p729_p1 = pnand %p728_p0, %p722_p9 }
 0x10a   : > { %732 = shalt.err (!%p729_p1)
}
 0x10b   : > { %635 = dma.vmem_to_hbm [thread:$0]  (%p923_p4), %s971_s7, 32, %s969_s13, %s403_s11   ;;  %v399_v21 = vcombine.high %v386_v20, %v386_v20 }
 0x10c   : > { %s1104_s21 = scalar_lea.vmem [#allocation4], %s952_s17  ;;  %s1013_s29 = scalar_lea.hbm %s1096_s5, %s955_s27 }
 0x10d   : > { %619 = vst.sshfl [vmem:[%s1104_s21] sm:$0x5 pattern:$0x73625140] %v389_v19  ;;  %s408_s24 = scalar_lea.sflag [#allocation5], %s960_s8  ;;  %s733_s9 = scalar_lea.vmem %s984_s10, 32 }
 0x10e   : > { %p734_p2 = scmp.ne.s32.totalorder %s984_s10, %s733_s9  ;;  %s849_s15 = smov [#allocation4]  }
 0x10f   : > { %s737_s0 = sshll.u32 %s849_s15, 4  ;;  %s738_s0 = int_to_ptr.vmem [resolvable:$false] %s737_s0 }
 0x110   : > { %p735_p3 = pnand %p734_p2, %p923_p4  ;;  %s739_s7 = scalar_lea.vmem %s738_s0, 64 }
 0x111   : > { %p740_p6 = scmp.lt.s32.totalorder %s984_s10, %s738_s0  ;;  %p741_p7 = scmp.lt.s32.totalorder %s739_s7, %s733_s9 }
 0x112   : > { %p736_p5 = pneg %p735_p3 }
 0x113   : > { %p742_p9 = por %p741_p7, %p740_p6 }
 0x115   : > { %p743_p10 = pnand %p742_p9, %p736_p5 }
 0x117   : > { %746 = shalt.err (!%p743_p10)
}
 0x118   : > { %s747_s27 = scalar_lea.hbm %s982_s25, 32  ;;  %s751_s21 = scalar_lea.hbm %s1095_s4, 64 }
 0x119   : > { %p748_p11 = scmp.ne.s32.totalorder %s982_s25, %s747_s27  ;;  %p752_p0 = scmp.lt.u32.totalorder %s982_s25, %s1095_s4 }
 0x11a   : > { %p753_p1 = scmp.lt.u32.totalorder %s751_s21, %s747_s27  ;;  %p755_p3 = scmp.lt.u32.totalorder %s747_s27, %s982_s25 }
 0x11b   : > { %p749_p12 = pnand %p748_p11, %p923_p4 }
 0x11c   : > { %p754_p2 = por %p753_p1, %p752_p0 }
 0x11d   : > { %p750_p13 = pneg %p749_p12 }
 0x11e   : > { %p756_p5 = por %p755_p3, %p754_p2 }
 0x120   : > { %p757_p6 = pnand %p756_p5, %p750_p13 }
 0x122   : > { %760 = shalt.err (!%p757_p6)
}
 0x123   : > { %636 = dma.vmem_to_hbm [thread:$0]  (%p923_p4), %s984_s10, 32, %s982_s25, %s408_s24  }
 0x124   : > { %s1105_s9 = scalar_lea.vmem [#allocation6], %s952_s17  ;;  %s761_s15 = scalar_lea.vmem %s1016_s14, 32 }
 0x125   : > { %401 = vst [vmem:[%s1105_s9] sm:$0x3] %v399_v21  ;;  %p762_p7 = scmp.ne.s32.totalorder %s1016_s14, %s761_s15  ;;  %s850_s0 = smov [#allocation6]  }
 0x126   : > { %s765_s7 = sshll.u32 %s850_s0, 4  ;;  %s766_s7 = int_to_ptr.vmem [resolvable:$false] %s765_s7 }
 0x127   : > { %p763_p9 = pnand %p762_p7, %p923_p4  ;;  %s767_s27 = scalar_lea.vmem %s766_s7, 64 }
 0x128   : > { %p768_p11 = scmp.lt.s32.totalorder %s1016_s14, %s766_s7  ;;  %p769_p12 = scmp.lt.s32.totalorder %s767_s27, %s761_s15 }
 0x129   : > { %p764_p10 = pneg %p763_p9 }
 0x12a   : > { %p770_p13 = por %p769_p12, %p768_p11 }
 0x12c   : > { %p771_p0 = pnand %p770_p13, %p764_p10 }
 0x12e   : > { %774 = shalt.err (!%p771_p0)
}
 0x12f   : > { %s775_s25 = scalar_lea.hbm %s1013_s29, 32  ;;  %s779_s13 = scalar_lea.hbm %s1096_s5, 64 }
 0x130   : > { %p776_p1 = scmp.ne.s32.totalorder %s1013_s29, %s775_s25  ;;  %p780_p5 = scmp.lt.u32.totalorder %s1013_s29, %s1096_s5 }
 0x131   : > { %p781_p6 = scmp.lt.u32.totalorder %s779_s13, %s775_s25  ;;  %p783_p9 = scmp.lt.u32.totalorder %s775_s25, %s1013_s29 }
 0x132   : > { %p777_p2 = pnand %p776_p1, %p923_p4 }
 0x133   : > { %p782_p7 = por %p781_p6, %p780_p5 }
 0x134   : > { %p778_p3 = pneg %p777_p2 }
 0x135   : > { %p784_p10 = por %p783_p9, %p782_p7 }
 0x137   : > { %p785_p11 = pnand %p784_p10, %p778_p3 }
 0x139   : > { %788 = shalt.err (!%p785_p11)
}
 0x13a   : > { %637 = dma.vmem_to_hbm [thread:$0]  (%p923_p4), %s1016_s14, 32, %s1013_s29, %s408_s24  }
 0x13b PF: > { %p651_p12 = scmp.ge.s32.totalorder %s843_s23, 2  ;;  %s473_s12 = sand.u32 1, %s823_s18  }
 0x13c   : > { %s474_s16 = scalar_lea.sflag [#allocation3], %s473_s12 }
 0x13d   : > { %p642_p13 = pnand %p651_p12, %p932_p8 }
 0x13f   : > { %814 = dma.done.wait (!%p642_p13), %s474_s16, 32  }
 0x140   : > { %816 = vsyncadd (!%p642_p13), %s474_s16, 4294967264  ;;  %s1106_s9 = sadd.s32 4294967294, %s843_s23  }
 0x141   : > { %s482_s15 = sand.u32 1, %s1106_s9  }
 0x142   : > { %s483_s28 = scalar_lea.sflag [#allocation5], %s482_s15 }
 0x143   : > { %818 = dma.done.wait (!%p642_p13), %s483_s28, 64  }
 0x144   : > { %820 = vsyncadd (!%p642_p13), %s483_s28, 4294967232  ;;  %s22_s23 = sadd.s32 1, %s843_s23   ;;  %s1107_s18 = smov %s827_s19 }
 0x145   : > { %p19_p4 = scmp.ge.s32.totalorder %s22_s23, 4   ;;  %s1108_s19 = smov %s831_s20 }
 0x146   : > { %s1109_s20 = smov %s938_s6  ;;  %s1110_s21 = smov %s839_s22 }
 0x147   : > { %s1111_s22 = smov %s1113_s26  ;;  %21 = sbr.rel (!%p19_p4) target bundleno = 8 (0x8), region = 99 }
 0x14e   :  { %497 = vsyncpa [#allocation3], 1 }
 0x14f   :  { %499 = vsyncpa [#allocation3 + $0x1], 1 }
 0x150   :  { %500 = vsyncpa [#allocation5], 1 }
 0x151   :  { %502 = vsyncpa [#allocation5 + $0x1], 1 }

</bundles_post_ra>
